<compile_context>
chip_gen: v5e
topology: v5e:2x2
jax: 0.10.0
libtpu: 0.0.40
codegen_flags: <defaults>
</compile_context>

<pallas_src>
import functools

import jax
import jax.numpy as jnp
from jax.experimental import pallas as pl
from jax.experimental.pallas import tpu as pltpu

_LANE = 128


# ----------------------------------------------------------------------------
# Kernel: three fused dots (feature-major), one lane-dense store.
# ----------------------------------------------------------------------------
def _bdq_fused_kernel(xt_ref,                 # (obs, tb)        bf16
                      w1t_ref, b1t_ref,       # (H1, obs),  (H1, 1)
                      w2t_ref, b2t_ref,       # (H2, H1),   (H2, 1)
                      w3t_ref, b3t_ref,       # (OUT, H2),  (OUT, 1)
                      out_ref,                # (OUT, tb)   f32
                      *, compute_dtype):
    # Stage 1: h = relu(W1^T x^T + b1)            -> (H1, tb)
    h = jnp.dot(w1t_ref[...], xt_ref[...],
                preferred_element_type=jnp.float32) + b1t_ref[...]
    h = jnp.maximum(h, 0.0).astype(compute_dtype)

    # Stage 2: z = relu(W2^T h + b2)              -> (H2, tb)
    z = jnp.dot(w2t_ref[...], h,
                preferred_element_type=jnp.float32) + b2t_ref[...]
    z = jnp.maximum(z, 0.0).astype(compute_dtype)

    # Stage 3: q^T = W3c^T z + b3                 -> (OUT, tb), lane-dense store
    out_ref[...] = jnp.dot(w3t_ref[...], z,
                           preferred_element_type=jnp.float32) + b3t_ref[...]


# ----------------------------------------------------------------------------
# Host-side one-time fusion of the per-branch / dueling structure into 3 dense
# (transposed, bf16) weight matrices.  Centering and value-add are linear, so
# this is exact up to rounding.
# ----------------------------------------------------------------------------
def fuse_params(params, n_branches, action_dim, *, compute_dtype=jnp.bfloat16):
    ws, bs = params["ws"], params["bs"]
    wv1, bv1 = params["wv1"], params["bv1"]
    wvf, bvf = params["wvf"], params["bvf"]
    wa1, ba1 = params["wa1"], params["ba1"]   # (NB, H1, HA), (NB, 1, HA)
    waf, baf = params["waf"], params["baf"]   # (NB, HA, AD), (NB, 1, AD)

    HV = wv1.shape[1]
    NB, _, HA = wa1.shape
    AD = action_dim

    # Stage 2: value-hidden + all branch-hidden layers share input h ->
    # concatenate column-wise into one wide matmul.
    w2 = jnp.concatenate([wv1] + [wa1[nb] for nb in range(NB)], axis=1)
    b2 = jnp.concatenate([bv1] + [ba1[nb] for nb in range(NB)], axis=1)

    # Fold dueling mean-centering into the final advantage weights: C = I - J/AD.
    C = jnp.eye(AD, dtype=jnp.float32) - jnp.full((AD, AD), 1.0 / AD, jnp.float32)
    waf_c = jnp.einsum("nij,jk->nik", waf, C)     # (NB, HA, AD)
    baf_c = jnp.einsum("nij,jk->nik", baf, C)     # (NB, 1, AD)

    # Stage 3: value rows broadcast wvf to every output column; advantage rows
    # form a block-diagonal of the centered final weights.
    w3 = jnp.zeros((HV + NB * HA, NB * AD), jnp.float32)
    w3 = w3.at[:HV, :].set(jnp.tile(wvf, (1, NB * AD)))
    for nb in range(NB):
        w3 = w3.at[HV + nb * HA: HV + (nb + 1) * HA,
                   nb * AD: (nb + 1) * AD].set(waf_c[nb])
    b3 = bvf[0, 0] + jnp.concatenate([baf_c[nb] for nb in range(NB)], axis=1)

    # Transpose once for the feature-major kernel; bf16 weights, f32 biases.
    return {
        "w1t": ws.T.astype(compute_dtype), "b1t": bs.T.astype(jnp.float32),
        "w2t": w2.T.astype(compute_dtype), "b2t": b2.T.astype(jnp.float32),
        "w3t": w3.T.astype(compute_dtype), "b3t": b3.T.astype(jnp.float32),
        "n_branches": NB, "action_dim": AD, "compute_dtype": compute_dtype,
    }


def _round_up(n, m):
    return ((n + m - 1) // m) * m


# ----------------------------------------------------------------------------
# Wrapper.
# ----------------------------------------------------------------------------
def branching_q_forward(x, fused, *, batch_tile=4096):
    """x: (B, obs_dim) f32.  Returns q_vals: (B, n_branches, action_dim) f32."""
    B, obs = x.shape
    NB, AD = fused["n_branches"], fused["action_dim"]
    OUT = NB * AD
    H1 = fused["w1t"].shape[0]
    H2 = fused["w2t"].shape[0]
    cdt = fused["compute_dtype"]

    # ---- batch tiling (batch lives on the lane axis) ------------------------
    # * single full block for tiny env-step batches (no padding needed)
    # * otherwise lane-aligned tiles, tile <= batch_tile (<=4096: fits v7x's
    #   64 MiB with double buffering), and at least 2 tiles so the "parallel"
    #   grid axis can shard across both v7x TensorCores.  B is padded up to a
    #   multiple of the tile (never a silent whole-batch fallback).
    if B < 2 * _LANE:
        tb, Bp = B, B
    else:
        tb = min(batch_tile, _round_up(B, _LANE) // 2)
        tb = max(_LANE, (tb // _LANE) * _LANE)
        Bp = _round_up(B, tb)
    grid = (Bp // tb,)

    xT = x.T.astype(cdt)                       # (obs, B), bf16
    if Bp != B:
        xT = jnp.pad(xT, ((0, 0), (0, Bp - B)))

    def _resident(arr):
        # Full-array block, constant index_map -> DMA'd once, stays in VMEM.
        return pl.BlockSpec(arr.shape, lambda i: (0, 0))

    flops = 2 * Bp * (obs * H1 + H1 * H2 + H2 * OUT)
    w_bytes = sum(int(fused[k].size) * fused[k].dtype.itemsize
                  for k in ("w1t", "b1t", "w2t", "b2t", "w3t", "b3t"))
    bytes_accessed = Bp * (obs * xT.dtype.itemsize + OUT * 4) + w_bytes

    qT = pl.pallas_call(
        functools.partial(_bdq_fused_kernel, compute_dtype=cdt),
        out_shape=jax.ShapeDtypeStruct((OUT, Bp), jnp.float32),
        grid=grid,
        in_specs=[
            pl.BlockSpec((obs, tb), lambda i: (0, i)),
            _resident(fused["w1t"]), _resident(fused["b1t"]),
            _resident(fused["w2t"]), _resident(fused["b2t"]),
            _resident(fused["w3t"]), _resident(fused["b3t"]),
        ],
        out_specs=pl.BlockSpec((OUT, tb), lambda i: (0, i)),
        compiler_params=pltpu.CompilerParams(
            dimension_semantics=("parallel",),
            vmem_limit_bytes=32 * 1024 * 1024),
        cost_estimate=pl.CostEstimate(
            flops=int(flops), transcendentals=0,
            bytes_accessed=int(bytes_accessed)),
    )(xT, fused["w1t"], fused["b1t"], fused["w2t"], fused["b2t"],
      fused["w3t"], fused["b3t"])

    # Drop batch padding, transpose back and reshape to (B, branches, actions).
    return qT[:, :B].T.reshape(B, NB, AD)


# ----------------------------------------------------------------------------
# Parameter init (torch.nn.Linear-style), unfused layout for the reference.
# ----------------------------------------------------------------------------
def _init_linear(key, fan_in, fan_out):
    kw, kb = jax.random.split(key)
    bound = 1.0 / jnp.sqrt(jnp.float32(fan_in))
    w = jax.random.uniform(kw, (fan_in, fan_out), jnp.float32, -bound, bound)
    b = jax.random.uniform(kb, (1, fan_out), jnp.float32, -bound, bound)
    return w, b


def init_params(key, obs_dim, n_branches, action_dim, h_shared, h_value, h_adv):
    keys = jax.random.split(key, 3 + 2 * n_branches)
    ws, bs = _init_linear(keys[0], obs_dim, h_shared)
    wv1, bv1 = _init_linear(keys[1], h_shared, h_value)
    wvf, bvf = _init_linear(keys[2], h_value, 1)
    wa1_l, ba1_l, waf_l, baf_l = [], [], [], []
    for nb in range(n_branches):
        wa1, ba1 = _init_linear(keys[3 + 2 * nb], h_shared, h_adv)
        waf, baf = _init_linear(keys[4 + 2 * nb], h_adv, action_dim)
        wa1_l.append(wa1); ba1_l.append(ba1)
        waf_l.append(waf); baf_l.append(baf)
    return {
        "ws": ws, "bs": bs,
        "wv1": wv1, "bv1": bv1,
        "wvf": wvf, "bvf": bvf,
        "wa1": jnp.stack(wa1_l), "ba1": jnp.stack(ba1_l),
        "waf": jnp.stack(waf_l), "baf": jnp.stack(baf_l),
    }


def reference_forward(x, params):
    """Pure-JAX f32 mirror of the PyTorch forward (unfused), for verification."""
    h = jax.nn.relu(x @ params["ws"] + params["bs"])
    v = jax.nn.relu(h @ params["wv1"] + params["bv1"])
    value = v @ params["wvf"] + params["bvf"]                          # (B, 1)
    a = jax.nn.relu(jnp.einsum("bi,nij->nbj", h, params["wa1"]) + params["ba1"])
    advs = jnp.einsum("nbj,njk->bnk", a, params["waf"]) \
        + jnp.transpose(params["baf"], (1, 0, 2))                      # (B, NB, AD)
    return value[:, :, None] + advs - advs.mean(axis=2, keepdims=True)


if __name__ == "__main__":
    OBS_DIM = 20
    N_BRANCHES = 3
    ACTION_DIM = 4
    H_SHARED, H_VALUE, H_ADV = 32, 16, 16

    key = jax.random.PRNGKey(0)
    k_params, k_x, k_x2 = jax.random.split(key, 3)
    params = init_params(k_params, OBS_DIM, N_BRANCHES, ACTION_DIM,
                         H_SHARED, H_VALUE, H_ADV)
    fused = fuse_params(params, N_BRANCHES, ACTION_DIM)

    # Small RL env-step batch: single-block path (no padding, grid=(1,)).
    x = jax.random.normal(k_x, (4, OBS_DIM), jnp.float32)
    q = jax.block_until_ready(branching_q_forward(x, fused))
    q_ref = reference_forward(x, params)
    assert q.shape == (4, N_BRANCHES, ACTION_DIM)
    assert jnp.allclose(q, q_ref, atol=5e-2, rtol=5e-2), \
        float(jnp.max(jnp.abs(q - q_ref)))

    # Larger, non-divisible batch: padded to the lane tile, grid >= 2
    # (exercises pipelining and both v7x TensorCores).
    x2 = jax.random.normal(k_x2, (300, OBS_DIM), jnp.float32)
    q2 = jax.block_until_ready(branching_q_forward(x2, fused))
    q2_ref = reference_forward(x2, params)
    assert q2.shape == (300, N_BRANCHES, ACTION_DIM)
    assert jnp.allclose(q2, q2_ref, atol=5e-2, rtol=5e-2), \
        float(jnp.max(jnp.abs(q2 - q2_ref)))

    print("KERNEL_OK")
</pallas_src>

<mosaic_0001>
module attributes {stable_mosaic.version = 11 : i64} {
  func.func @_bdq_fused_kernel(%arg0: i32, %arg1: memref<20x4xbf16, #tpu.memory_space<vmem>>, %arg2: memref<32x20xbf16, #tpu.memory_space<vmem>>, %arg3: memref<32x1xf32, #tpu.memory_space<vmem>>, %arg4: memref<64x32xbf16, #tpu.memory_space<vmem>>, %arg5: memref<64x1xf32, #tpu.memory_space<vmem>>, %arg6: memref<12x64xbf16, #tpu.memory_space<vmem>>, %arg7: memref<12x1xf32, #tpu.memory_space<vmem>>, %arg8: memref<12x4xf32, #tpu.memory_space<vmem>>) attributes {dimension_semantics = [#tpu.dimension_semantics<parallel>], iteration_bounds = array<i64: 1>, scalar_prefetch = 0 : i64, scratch_operands = 0 : i64, tpu.core_type = #tpu.core_type<tc>, window_params = [{transform_indices = @transform_0, window_bounds = array<i64: 20, 4>}, {pipeline_mode = #tpu.pipeline_mode<synchronous>, transform_indices = @transform_1, window_bounds = array<i64: 32, 20>}, {pipeline_mode = #tpu.pipeline_mode<synchronous>, transform_indices = @transform_2, window_bounds = array<i64: 32, 1>}, {pipeline_mode = #tpu.pipeline_mode<synchronous>, transform_indices = @transform_3, window_bounds = array<i64: 64, 32>}, {pipeline_mode = #tpu.pipeline_mode<synchronous>, transform_indices = @transform_4, window_bounds = array<i64: 64, 1>}, {pipeline_mode = #tpu.pipeline_mode<synchronous>, transform_indices = @transform_5, window_bounds = array<i64: 12, 64>}, {pipeline_mode = #tpu.pipeline_mode<synchronous>, transform_indices = @transform_6, window_bounds = array<i64: 12, 1>}, {transform_indices = @transform_7, window_bounds = array<i64: 12, 4>}]} {
    %c0 = arith.constant 0 : index
    %c0_0 = arith.constant 0 : index
    %0 = vector.load %arg2[%c0, %c0_0] : memref<32x20xbf16, #tpu.memory_space<vmem>>, vector<32x20xbf16>
    %c0_1 = arith.constant 0 : index
    %c0_2 = arith.constant 0 : index
    %1 = vector.load %arg1[%c0_1, %c0_2] : memref<20x4xbf16, #tpu.memory_space<vmem>>, vector<20x4xbf16>
    %cst = arith.constant dense<0.000000e+00> : vector<32x4xf32>
    %2 = tpu.matmul %0, %1, %cst {dimension_numbers = #tpu.dot_dimension_numbers<[1], [0], [0], [1], [0, 0, 1, 1], [], []>} : vector<32x20xbf16>, vector<20x4xbf16>, vector<32x4xf32> -> vector<32x4xf32>
    %c0_3 = arith.constant 0 : index
    %c0_4 = arith.constant 0 : index
    %3 = vector.load %arg3[%c0_3, %c0_4] : memref<32x1xf32, #tpu.memory_space<vmem>>, vector<32x1xf32>
    %4 = vector.broadcast %3 : vector<32x1xf32> to vector<32x4xf32>
    %5 = arith.addf %2, %4 : vector<32x4xf32>
    %cst_5 = arith.constant 0.000000e+00 : f32
    %6 = vector.broadcast %cst_5 : f32 to vector<32x4xf32>
    %7 = arith.maximumf %5, %6 : vector<32x4xf32>
    %8 = arith.truncf %7 : vector<32x4xf32> to vector<32x4xbf16>
    %c0_6 = arith.constant 0 : index
    %c0_7 = arith.constant 0 : index
    %9 = vector.load %arg4[%c0_6, %c0_7] : memref<64x32xbf16, #tpu.memory_space<vmem>>, vector<64x32xbf16>
    %cst_8 = arith.constant dense<0.000000e+00> : vector<64x4xf32>
    %10 = tpu.matmul %9, %8, %cst_8 {dimension_numbers = #tpu.dot_dimension_numbers<[1], [0], [0], [1], [0, 0, 1, 1], [], []>} : vector<64x32xbf16>, vector<32x4xbf16>, vector<64x4xf32> -> vector<64x4xf32>
    %c0_9 = arith.constant 0 : index
    %c0_10 = arith.constant 0 : index
    %11 = vector.load %arg5[%c0_9, %c0_10] : memref<64x1xf32, #tpu.memory_space<vmem>>, vector<64x1xf32>
    %12 = vector.broadcast %11 : vector<64x1xf32> to vector<64x4xf32>
    %13 = arith.addf %10, %12 : vector<64x4xf32>
    %cst_11 = arith.constant 0.000000e+00 : f32
    %14 = vector.broadcast %cst_11 : f32 to vector<64x4xf32>
    %15 = arith.maximumf %13, %14 : vector<64x4xf32>
    %16 = arith.truncf %15 : vector<64x4xf32> to vector<64x4xbf16>
    %c0_12 = arith.constant 0 : index
    %c0_13 = arith.constant 0 : index
    %17 = vector.load %arg6[%c0_12, %c0_13] : memref<12x64xbf16, #tpu.memory_space<vmem>>, vector<12x64xbf16>
    %cst_14 = arith.constant dense<0.000000e+00> : vector<12x4xf32>
    %18 = tpu.matmul %17, %16, %cst_14 {dimension_numbers = #tpu.dot_dimension_numbers<[1], [0], [0], [1], [0, 0, 1, 1], [], []>} : vector<12x64xbf16>, vector<64x4xbf16>, vector<12x4xf32> -> vector<12x4xf32>
    %c0_15 = arith.constant 0 : index
    %c0_16 = arith.constant 0 : index
    %19 = vector.load %arg7[%c0_15, %c0_16] : memref<12x1xf32, #tpu.memory_space<vmem>>, vector<12x1xf32>
    %20 = vector.broadcast %19 : vector<12x1xf32> to vector<12x4xf32>
    %21 = arith.addf %18, %20 : vector<12x4xf32>
    %c0_17 = arith.constant 0 : index
    %c0_18 = arith.constant 0 : index
    %22 = vector.load %arg8[%c0_17, %c0_18] : memref<12x4xf32, #tpu.memory_space<vmem>>, vector<12x4xf32>
    tpu.vector_store %arg8[%c0_17, %c0_18], %21 {strides = array<i32>} : memref<12x4xf32, #tpu.memory_space<vmem>>, vector<12x4xf32>,
    return
  }
  func.func @transform_0(%arg0: i32) -> (i32, i32) {
    %c0_i32 = arith.constant 0 : i32
    %c0_i32_0 = arith.constant 0 : i32
    return %c0_i32, %arg0 : i32, i32
  }
  func.func @transform_1(%arg0: i32) -> (i32, i32) {
    %c0_i32 = arith.constant 0 : i32
    %c0_i32_0 = arith.constant 0 : i32
    %c0_i32_1 = arith.constant 0 : i32
    return %c0_i32, %c0_i32_0 : i32, i32
  }
  func.func @transform_2(%arg0: i32) -> (i32, i32) {
    %c0_i32 = arith.constant 0 : i32
    %c0_i32_0 = arith.constant 0 : i32
    %c0_i32_1 = arith.constant 0 : i32
    return %c0_i32, %c0_i32_0 : i32, i32
  }
  func.func @transform_3(%arg0: i32) -> (i32, i32) {
    %c0_i32 = arith.constant 0 : i32
    %c0_i32_0 = arith.constant 0 : i32
    %c0_i32_1 = arith.constant 0 : i32
    return %c0_i32, %c0_i32_0 : i32, i32
  }
  func.func @transform_4(%arg0: i32) -> (i32, i32) {
    %c0_i32 = arith.constant 0 : i32
    %c0_i32_0 = arith.constant 0 : i32
    %c0_i32_1 = arith.constant 0 : i32
    return %c0_i32, %c0_i32_0 : i32, i32
  }
  func.func @transform_5(%arg0: i32) -> (i32, i32) {
    %c0_i32 = arith.constant 0 : i32
    %c0_i32_0 = arith.constant 0 : i32
    %c0_i32_1 = arith.constant 0 : i32
    return %c0_i32, %c0_i32_0 : i32, i32
  }
  func.func @transform_6(%arg0: i32) -> (i32, i32) {
    %c0_i32 = arith.constant 0 : i32
    %c0_i32_0 = arith.constant 0 : i32
    %c0_i32_1 = arith.constant 0 : i32
    return %c0_i32, %c0_i32_0 : i32, i32
  }
  func.func @transform_7(%arg0: i32) -> (i32, i32) {
    %c0_i32 = arith.constant 0 : i32
    %c0_i32_0 = arith.constant 0 : i32
    return %c0_i32, %arg0 : i32, i32
  }
}

</mosaic_0001>

<bundles_post_ra>
// kernel: tpu_custom_call.1
= control target key start
LH: loop header
LB: loop body
LE: loop exit
PB: predicated region body
PF: predicated region fallthrough
CT: control target
= control target key end

     0   :  { %v341_v1 = vmov 0   ;;  %vm84_vm0 = vcmask 1041408   ;;  %vm77_vm1 = vcmask 162816   ;;  %vm189_vm2 = vcmask 261120   ;;  %s460_s0 = inlined_call_operand.vmem [shape: bf16[20,4], index: 0, kind: input, shape index: {}]   ;;  %s461_s2 = inlined_call_operand.vmem [shape: f32[32,1], index: 2, kind: input, shape index: {}]   ;;  %s462_s1 = inlined_call_operand.vmem [shape: bf16[32,20], index: 1, kind: input, shape index: {}]   ;;  %s463_s4 = inlined_call_operand.vmem [shape: f32[64,1], index: 4, kind: input, shape index: {}]   ;;  %s464_s6 = inlined_call_operand.vmem [shape: f32[12,1], index: 6, kind: input, shape index: {}]   ;;  %s465_s3 = inlined_call_operand.vmem [shape: bf16[64,32], index: 3, kind: input, shape index: {}]   ;;  %s466_s5 = inlined_call_operand.vmem [shape: bf16[12,64], index: 5, kind: input, shape index: {}]   ;;  %s467_s7 = inlined_call_operand.vmem [shape: f32[12,4], index: 7, kind: output, shape index: {}]  }
   0x1   :  { %v33_v0 = vld [vmem:[%s460_s0 + $0x8] sm:$0x3]  ;;  %338 = vset.pattern.permute.xlu0 %v341_v1  ;;  %v36_v2 = vld [vmem:[%s461_s2 + $0x10] sm:$0xff]  ;;  %339 = vset.pattern.permute.xlu1 %v341_v1  ;;  %v34_v4 = vld [vmem:[%s461_s2] sm:$0xff]  ;;  %vm262_vm3 = vcmask 523264   ;;  %vm280_vm4 = vcmask 31744  }
   0x2   :  { %v73_v3 = vunpack.c.l.b16 %v33_v0  ;;  %50 = vperm.xlu0 %338, %v36_v2   ;;  %340 = vset.pattern.permute.xlu2 %v341_v1  ;;  %v329_v7 = vld [vmem:[%s460_s0] sm:$0xff]  ;;  %v37_v8 = vld [vmem:[%s461_s2 + $0x18] sm:$0xff]  ;;  %v35_v9 = vld [vmem:[%s461_s2 + $0x8] sm:$0xff]  ;;  %vm282_vm5 = vcmask 27648  }
   0x3   :  { %40 = vperm.xlu1 %339, %v34_v4   ;;  %v327_v10 = vld [vmem:[%s462_s1] sm:$0xff]  ;;  %v126_v12 = vld [vmem:[%s463_s4 + $0x28] sm:$0xff]  ;;  %v124_v13 = vld [vmem:[%s463_s4 + $0x18] sm:$0xff] }
   0x4   :  { %v75_v5 = vpack.c.b16 %v73_v3, %v73_v3  ;;  %v125_v11 = vld [vmem:[%s463_s4 + $0x20] sm:$0xff]  ;;  %v328_v15 = vld [vmem:[%s462_s1 + $0x8] sm:$0xff]  ;;  %v127_v23 = vld [vmem:[%s463_s4 + $0x30] sm:$0xff] }
   0x5   :  { %v121_v14 = vld [vmem:[%s463_s4] sm:$0xff]  ;;  %v246_v17 = vld [vmem:[%s464_s6 + $0x8] sm:$0xf]  ;;  %161 = vperm.xlu2 %340, %v127_v23   ;;  %v128_v35 = vld [vmem:[%s463_s4 + $0x38] sm:$0xff] }
   0x6   :  { %v86_v6 = vsel %vm84_vm0, %v75_v5, 0  ;;  %v245_v16 = vld [vmem:[%s464_s6] sm:$0xff]  ;;  %v332_v39 = vld [vmem:[%s465_s3 + $0x10] sm:$0xff]  ;;  %v122_v41 = vld [vmem:[%s463_s4 + $0x8] sm:$0xff] }
   0x7   :  { %94 = vmatpush.bf16.msra.mxu0 %v86_v6  ;;  %v330_v38 = vld [vmem:[%s465_s3] sm:$0xff]  ;;  %v123_v40 = vld [vmem:[%s463_s4 + $0x10] sm:$0xff]  ;;  %v331_v42 = vld [vmem:[%s465_s3 + $0x8] sm:$0xff] }
   0x8   :  { %v333_v43 = vld [vmem:[%s465_s3 + $0x18] sm:$0xff] }
   0xa   :  { %55 = vperm.xlu0 %338, %v37_v8  }
   0xb   :  { %95 = vmatpush.bf16.msra.mxu0 %v329_v7  ;;  %45 = vperm.xlu1 %339, %v35_v9  }
   0xd   :  { %166 = vperm.xlu2 %340, %v128_v35  }
   0xe   :  { %300 = vmatmul.msk.bf16.vlgmr.msra.gmra.mxu0 %vm77_vm1, %v327_v10 }
  0x12   :  { %151 = vperm.xlu0 %338, %v125_v11  }
  0x13   :  { %156 = vperm.xlu1 %339, %v126_v12  }
  0x15   :  { %141 = vperm.xlu2 %340, %v123_v40  }
  0x1a   :  { %146 = vperm.xlu0 %338, %v124_v13  }
  0x1b   :  { %131 = vperm.xlu1 %339, %v121_v14  }
  0x1d   :  { %136 = vperm.xlu2 %340, %v122_v41  }
  0x1e   :  { %301 = vmatmul.msk.bf16.gmra.mxu0 %vm77_vm1, %v328_v15  ;;  %v324_v15 = vld [vmem:[%s466_s5] sm:$0xf] }
  0x22   :  { %249 = vperm.xlu0 %338, %v245_v16   ;;  %v334_v16 = vld [vmem:[%s466_s5] sm:$0x30] }
  0x23   :  { %254 = vperm.xlu1 %339, %v246_v17  }
  0x5f   :  { %v162_v45 = vpop.permute.xlu2 %161 }
  0x67   :  { %v167_v49 = vpop.permute.xlu2 %166 }
  0x6f   :  { %v142_v53 = vpop.permute.xlu2 %141 }
  0x74   :  { %v51_v20 = vpop.permute.xlu0 %50 }
  0x75   :  { %v41_v21 = vpop.permute.xlu1 %40 }
  0x77   :  { %v137_v3 = vpop.permute.xlu2 %136 }
  0x7c   :  { %v56_v24 = vpop.permute.xlu0 %55 }
  0x7d   :  { %v46_v26 = vpop.permute.xlu1 %45 }
  0x84   :  { %v152_v52 = vpop.permute.xlu0 %151 }
  0x85   :  { %v157_v55 = vpop.permute.xlu1 %156 }
  0x8b   :  { %v97_v18 = vpop.f32.mrf.mxu0 }
  0x8c   :  { %v98_v30 = vadd.f32 %v97_v18, %v41_v21  ;;  %v147_v63 = vpop.permute.xlu0 %146  ;;  %v325_v18 = vor.u32 %v334_v16, %v324_v15 }
  0x8d   :  { %v132_v9 = vpop.permute.xlu1 %131 }
  0x8e   :  { %v107_v36 = vmax.f32 %v98_v30, 0.0 }
  0x93   :  { %v99_v19 = vpop.f32.mrf.mxu0 }
  0x94   :  { %v100_v28 = vadd.f32 %v99_v19, %v46_v26  ;;  %v250_v19 = vpop.permute.xlu0 %249 }
  0x96   :  { %v108_v33 = vmax.f32 %v100_v28, 0.0 }
  0x98   :  { %v111_v37 = vpack.c.bf16 %v108_v33, %v107_v36 }
  0x9b   :  { %v102_v22 = vpop.f32.mrf.mxu0 }
  0x9c   :  { %v103_v25 = vadd.f32 %v102_v22, %v51_v20  ;;  %v255_v22 = vpop.permute.xlu1 %254 }
  0x9e   :  { %v109_v31 = vmax.f32 %v103_v25, 0.0 }
  0xa3   :  { %v104_v27 = vpop.f32.mrf.mxu0 }
  0xa4   :  { %v105_v29 = vadd.f32 %v104_v27, %v56_v24 }
  0xa6   :  { %v110_v32 = vmax.f32 %v105_v29, 0.0 }
  0xa8   :  { %v112_v34 = vpack.c.bf16 %v110_v32, %v109_v31 }
  0xaa   :  { %208 = vmatpush.bf16.msra.mxu1 %v112_v34  ;;  %335 = vmatpush.bf16.msra.mxu3 %v112_v34 }
  0xae   :  { %209 = vmatpush.bf16.msra.mxu1 %v111_v37  ;;  %336 = vmatpush.bf16.msra.mxu3 %v111_v37 }
  0xb1   :  { %318 = vmatmul.msk.bf16.vlgmr.msra.gmra.mxu1 %vm189_vm2, %v330_v38  ;;  %320 = vmatmul.msk.bf16.vlgmr.msra.gmra.mxu3 %vm189_vm2, %v332_v39 }
  0xc1   :  { %319 = vmatmul.msk.bf16.gmra.mxu1 %vm189_vm2, %v331_v42  ;;  %321 = vmatmul.msk.bf16.gmra.mxu3 %vm189_vm2, %v333_v43 }
 0x12e   :  { %v211_v44 = vpop.f32.mrf.mxu1 }
 0x12f   :  { %v212_v10 = vadd.f32 %v211_v44, %v132_v9 }
 0x131   :  { %v231_v14 = vmax.f32 %v212_v10, 0.0 }
 0x134   :  { %v221_v46 = vpop.f32.mrf.mxu3 }
 0x135   :  { %v222_v60 = vadd.f32 %v221_v46, %v152_v52 }
 0x136   :  { %v213_v47 = vpop.f32.mrf.mxu1 }
 0x137   :  { %v235_v4 = vmax.f32 %v222_v60, 0.0  ;;  %v214_v6 = vadd.f32 %v213_v47, %v137_v3 }
 0x139   :  { %v232_v12 = vmax.f32 %v214_v6, 0.0 }
 0x13b   :  { %v239_v17 = vpack.c.bf16 %v232_v12, %v231_v14 }
 0x13c   :  { %v223_v48 = vpop.f32.mrf.mxu3 }
 0x13d   :  { %v224_v57 = vadd.f32 %v223_v48, %v157_v55 }
 0x13e   :  { %v216_v50 = vpop.f32.mrf.mxu1 }
 0x13f   :  { %v236_v0 = vmax.f32 %v224_v57, 0.0  ;;  %v217_v5 = vadd.f32 %v216_v50, %v142_v53 }
 0x141   :  { %v241_v8 = vpack.c.bf16 %v236_v0, %v235_v4  ;;  %v233_v11 = vmax.f32 %v217_v5, 0.0 }
 0x144   :  { %v226_v51 = vpop.f32.mrf.mxu3 }
 0x145   :  { %v227_v54 = vadd.f32 %v226_v51, %v162_v45 }
 0x146   :  { %v218_v59 = vpop.f32.mrf.mxu1 }
 0x147   :  { %v237_v61 = vmax.f32 %v227_v54, 0.0  ;;  %v219_v1 = vadd.f32 %v218_v59, %v147_v63 }
 0x149   :  { %v234_v7 = vmax.f32 %v219_v1, 0.0 }
 0x14b   :  { %v240_v13 = vpack.c.bf16 %v234_v7, %v233_v11 }
 0x14c   :  { %v228_v56 = vpop.f32.mrf.mxu3 }
 0x14d   :  { %v229_v58 = vadd.f32 %v228_v56, %v167_v49 }
 0x14f   :  { %v238_v62 = vmax.f32 %v229_v58, 0.0 }
 0x151   :  { %v242_v2 = vpack.c.bf16 %v238_v62, %v237_v61 }
 0x153   :  { %270 = vmatpush.bf16.msra.mxu2 %v242_v2 }
 0x157   :  { %271 = vmatpush.bf16.msra.mxu2 %v241_v8 }
 0x15b   :  { %272 = vmatpush.bf16.msra.mxu2 %v240_v13 }
 0x15f   :  { %273 = vmatpush.bf16.msra.mxu2 %v239_v17 }
 0x162   :  { %326 = vmatmul.msk.bf16.vlgmr.msra.gmra.mxu2 %vm262_vm3, %v325_v18 }
 0x1e5   :  { %v275_v20 = vpop.f32.mrf.mxu2 }
 0x1e6   :  { %v276_v21 = vadd.f32 %v275_v20, %v250_v19 }
 0x1e8   :  { %281 = vst.msk [vmem:[%s467_s7] sm:$0xff] %vm280_vm4, %v276_v21 }
 0x1ed   :  { %v277_v23 = vpop.f32.mrf.mxu2 }
 0x1ee   :  { %v278_v24 = vadd.f32 %v277_v23, %v255_v22 }
 0x1f0   :  { %283 = vst.msk [vmem:[%s467_s7 + $0x8] sm:$0xf] %vm282_vm5, %v278_v24 }

</bundles_post_ra>
